<compile_context>
chip_gen: v7x
topology: tpu7x:2x2x1
jax: 0.10.0
libtpu: 0.0.40
codegen_flags: <defaults>
</compile_context>

<pallas_src>
import jax
import jax.numpy as jnp
from jax import lax
from jax.experimental import pallas as pl
from jax.experimental.pallas import tpu as pltpu


# ---------------------------------------------------------------------------
# Tiling helpers
# ---------------------------------------------------------------------------

_TM, _TN, _TK, _TB = 512, 512, 512, 256   # preferred tile sizes


def _pick_tile(dim, pref, granule):
    """Largest divisor of `dim` that is <= `pref` and a multiple of `granule`
    (lane=128 / sublane=8 alignment).  Falls back to the full dimension (always
    a legal block) only if no aligned divisor exists."""
    if dim <= pref:
        return dim
    for cand in range(pref, granule - 1, -1):
        if dim % cand == 0 and cand % granule == 0:
            return cand
    return dim


def _vmem_limit(buffer_bytes_estimate):
    """Explicit scoped-VMEM limit: 2x headroom over the double-buffered tile
    estimate, clamped to [32 MiB default, 64 MiB v7x physical]."""
    return int(min(max(2 * buffer_bytes_estimate, 32 << 20), 64 << 20))


# ---------------------------------------------------------------------------
# Pallas kernels
# ---------------------------------------------------------------------------

def _matmul_bias_kernel(x_ref, w_ref, b_ref, o_ref):
    """Tiled logits = x @ W + b.  The f32 output block is resident across the
    K grid axis and doubles as the accumulator (no scratch)."""
    k = pl.program_id(2)

    @pl.when(k == 0)
    def _init():
        o_ref[...] = jnp.zeros_like(o_ref)

    # x is streamed as f32 and cast to bf16 in-kernel (MXU operands bf16,
    # f32 accumulation) -- no separate HBM cast pass in the wrapper.
    o_ref[...] += jnp.dot(x_ref[...].astype(jnp.bfloat16), w_ref[...],
                          preferred_element_type=jnp.float32)

    @pl.when(k == pl.num_programs(2) - 1)
    def _finalize():
        o_ref[...] += b_ref[...]


def _fused_loss_acc_kernel(x_ref, w_ref, b_ref, t_ref, loss_ref, acc_ref):
    """Fused logits + cross-entropy partial sum + argmax-correct count for one
    batch tile.  Each grid step owns its own lane-dense (1, 8, 128) output
    blocks, so the batch axis can be megacore-"parallel" (no shared state).

    x: [tb, D] f32     w: [D, C] bf16 (resident)   b: [1, C] f32 (resident)
    t: [tb, 1] i32     loss/acc out: [1, 8, 128] f32 broadcast partial sums
    """
    logits = jnp.dot(x_ref[...].astype(jnp.bfloat16), w_ref[...],
                     preferred_element_type=jnp.float32)
    logits = logits + b_ref[...]                                   # [tb, C] f32

    # Numerically stable log-sum-exp (matches F.cross_entropy).
    row_max = jnp.max(logits, axis=-1, keepdims=True)              # [tb, 1]
    lse = row_max + jnp.log(
        jnp.sum(jnp.exp(logits - row_max), axis=-1, keepdims=True))

    # Target logit gathered via an iota compare (no one-hot materialized).
    tgt = t_ref[...]                                               # [tb, 1] i32
    col = lax.broadcasted_iota(jnp.int32, logits.shape, 1)         # [tb, C]
    tgt_logit = jnp.sum(jnp.where(col == tgt, logits, 0.0),
                        axis=-1, keepdims=True)                    # [tb, 1]

    # Argmax with first-index tie-break (torch.argmax semantics).
    num_classes = logits.shape[-1]
    preds = jnp.min(jnp.where(logits == row_max, col, num_classes),
                    axis=-1, keepdims=True)                        # [tb, 1]

    loss_sum = jnp.sum(lse - tgt_logit)                            # scalar f32
    n_correct = jnp.sum((preds == tgt).astype(jnp.float32))        # scalar f32

    # Lane-dense broadcast stores (unmasked vst); JAX sums [:, 0, 0] later.
    loss_ref[...] = jnp.full(loss_ref.shape, loss_sum, jnp.float32)
    acc_ref[...] = jnp.full(acc_ref.shape, n_correct, jnp.float32)


# ---------------------------------------------------------------------------
# Wrappers
# ---------------------------------------------------------------------------

def linear_forward(x, w_bf16, b):
    """Stand-in forward: f32 logits = x @ W + b (bf16 MXU operands, in-kernel
    cast of x, f32 accumulation into the resident output block)."""
    B, D = x.shape
    _, C = w_bf16.shape
    tm = _pick_tile(B, _TM, 8)
    tn = _pick_tile(C, _TN, 128)
    tk = _pick_tile(D, _TK, 128)
    est = 2 * (tm * tk * 4 + tk * tn * 2 + tn * 4 + tm * tn * 4)
    return pl.pallas_call(
        _matmul_bias_kernel,
        out_shape=jax.ShapeDtypeStruct((B, C), jnp.float32),
        grid_spec=pltpu.PrefetchScalarGridSpec(
            num_scalar_prefetch=0,
            grid=(B // tm, C // tn, D // tk),
            in_specs=[
                pl.BlockSpec((tm, tk), lambda i, j, k: (i, k)),   # x (f32)
                pl.BlockSpec((tk, tn), lambda i, j, k: (k, j)),   # W (bf16)
                pl.BlockSpec((1, tn), lambda i, j, k: (0, j)),    # bias (f32)
            ],
            out_specs=pl.BlockSpec((tm, tn), lambda i, j, k: (i, j)),
        ),
        compiler_params=pltpu.CompilerParams(
            dimension_semantics=("parallel", "parallel", "arbitrary"),
            vmem_limit_bytes=_vmem_limit(est)),
    )(x, w_bf16, b)


def fused_linear_loss_acc(x, w_bf16, b, targets):
    """Fused forward + F.cross_entropy(mean) + accuracy.  Returns f32 scalars.
    Per-batch-tile partial sums come back as lane-dense (ntiles, 8, 128)
    blocks with a "parallel" batch axis (both v7x TensorCores); the final mean
    is a tiny JAX reduction."""
    B, D = x.shape
    _, C = w_bf16.shape
    tb = _pick_tile(B, _TB, 8)
    ntiles = B // tb
    targets_2d = targets.astype(jnp.int32).reshape(B, 1)          # glue
    est = (2 * (tb * D * 4 + tb * 4)          # x + targets tiles (dbl-buffered)
           + 2 * (D * C * 2 + C * 4)          # resident W + bias buffers
           + 4 * (8 * 128 * 4))               # two tiny per-tile outputs
    out_block = pl.BlockSpec((1, 8, 128), lambda i: (i, 0, 0))
    loss_parts, acc_parts = pl.pallas_call(
        _fused_loss_acc_kernel,
        out_shape=(
            jax.ShapeDtypeStruct((ntiles, 8, 128), jnp.float32),
            jax.ShapeDtypeStruct((ntiles, 8, 128), jnp.float32),
        ),
        grid_spec=pltpu.PrefetchScalarGridSpec(
            num_scalar_prefetch=0,
            grid=(ntiles,),
            in_specs=[
                pl.BlockSpec((tb, D), lambda i: (i, 0)),   # x batch tile (f32)
                pl.BlockSpec((D, C), lambda i: (0, 0)),    # W resident (bf16)
                pl.BlockSpec((1, C), lambda i: (0, 0)),    # bias resident
                pl.BlockSpec((tb, 1), lambda i: (i, 0)),   # targets tile
            ],
            out_specs=(out_block, out_block),
        ),
        compiler_params=pltpu.CompilerParams(
            dimension_semantics=("parallel",),
            vmem_limit_bytes=_vmem_limit(est)),
    )(x, w_bf16, b, targets_2d)
    inv_b = jnp.float32(1.0 / B)
    loss = jnp.sum(loss_parts[:, 0, 0]) * inv_b
    acc = jnp.sum(acc_parts[:, 0, 0]) * inv_b
    return loss, acc


# ---------------------------------------------------------------------------
# Model
# ---------------------------------------------------------------------------

class BaseModelPallas:
    """JAX/Pallas port of BaseModel's training utilities with a linear
    stand-in forward (BaseModel.forward itself is abstract)."""

    def __init__(self, in_features, num_classes, key):
        kw, kb = jax.random.split(key)
        # bf16 weights feed the MXU at full rate; bias + softmax stay f32.
        self.w = (jax.random.normal(kw, (in_features, num_classes), jnp.float32)
                  * 0.02).astype(jnp.bfloat16)
        self.b = jax.random.normal(kb, (1, num_classes), jnp.float32) * 0.02

    def forward(self, x):
        # TODO(synk): BaseModel.forward is abstract (no fixed architecture);
        # a linear classifier is used as the stand-in.
        return linear_forward(x, self.w, self.b)

    def training_step(self, batch):
        inputs, targets = batch
        loss, _ = fused_linear_loss_acc(inputs, self.w, self.b, targets)
        return loss

    def validation_step(self, batch):
        inputs, targets = batch
        loss, acc = fused_linear_loss_acc(inputs, self.w, self.b, targets)
        return {"val_loss": loss, "val_acc": acc}


# ---------------------------------------------------------------------------
# Demo
# ---------------------------------------------------------------------------

if __name__ == "__main__":
    key = jax.random.PRNGKey(0)
    k_model, k_x, k_t = jax.random.split(key, 3)

    # Small, lane-aligned shapes (last dim multiple of 128, sublane mult of 8).
    B, D, C = 8, 128, 128
    x = jax.random.normal(k_x, (B, D), jnp.float32)
    targets = jax.random.randint(k_t, (B,), 0, C, jnp.int32)

    model = BaseModelPallas(in_features=D, num_classes=C, key=k_model)

    loss = model.training_step((x, targets))
    metrics = model.validation_step((x, targets))
    logits = model.forward(x)

    jax.block_until_ready((loss, metrics["val_loss"], metrics["val_acc"], logits))

    # Pure-JAX reference on the (Pallas) forward logits.
    lse_ref = jax.scipy.special.logsumexp(logits.astype(jnp.float32), axis=-1)
    loss_ref = jnp.mean(lse_ref - logits[jnp.arange(B), targets])
    acc_ref = jnp.mean((jnp.argmax(logits, axis=-1) == targets)
                       .astype(jnp.float32))

    assert bool(jnp.isfinite(loss))
    assert bool(jnp.isfinite(metrics["val_loss"]))
    assert 0.0 <= float(metrics["val_acc"]) <= 1.0
    assert abs(float(loss) - float(loss_ref)) < 1e-2 * max(1.0, abs(float(loss_ref)))
    assert abs(float(metrics["val_acc"]) - float(acc_ref)) < 1e-3

    print("KERNEL_OK")
</pallas_src>

<mosaic_0001>
module attributes {stable_mosaic.version = 11 : i64} {
  func.func @_fused_loss_acc_kernel(%arg0: i32, %arg1: memref<8x128xf32, #tpu.memory_space<vmem>>, %arg2: memref<128x128xbf16, #tpu.memory_space<vmem>>, %arg3: memref<1x128xf32, #tpu.memory_space<vmem>>, %arg4: memref<8x1xi32, #tpu.memory_space<vmem>>, %arg5: memref<1x8x128xf32, #tpu.memory_space<vmem>>, %arg6: memref<1x8x128xf32, #tpu.memory_space<vmem>>) attributes {dimension_semantics = [#tpu.dimension_semantics<parallel>], iteration_bounds = array<i64: 1>, scalar_prefetch = 0 : i64, scratch_operands = 0 : i64, tpu.core_type = #tpu.core_type<tc>, window_params = [{transform_indices = @transform_0, window_bounds = array<i64: 8, 128>}, {pipeline_mode = #tpu.pipeline_mode<synchronous>, transform_indices = @transform_1, window_bounds = array<i64: 128, 128>}, {pipeline_mode = #tpu.pipeline_mode<synchronous>, transform_indices = @transform_2, window_bounds = array<i64: 1, 128>}, {transform_indices = @transform_3, window_bounds = array<i64: 8, 1>}, {transform_indices = @transform_4, window_bounds = array<i64: 1, 8, 128>}, {transform_indices = @transform_5, window_bounds = array<i64: 1, 8, 128>}]} {
    %c0 = arith.constant 0 : index
    %c0_0 = arith.constant 0 : index
    %0 = vector.load %arg1[%c0, %c0_0] : memref<8x128xf32, #tpu.memory_space<vmem>>, vector<8x128xf32>
    %1 = arith.truncf %0 : vector<8x128xf32> to vector<8x128xbf16>
    %c0_1 = arith.constant 0 : index
    %c0_2 = arith.constant 0 : index
    %2 = vector.load %arg2[%c0_1, %c0_2] : memref<128x128xbf16, #tpu.memory_space<vmem>>, vector<128x128xbf16>
    %cst = arith.constant dense<0.000000e+00> : vector<8x128xf32>
    %3 = tpu.matmul %1, %2, %cst {dimension_numbers = #tpu.dot_dimension_numbers<[1], [0], [0], [1], [0, 0, 1, 1], [], []>} : vector<8x128xbf16>, vector<128x128xbf16>, vector<8x128xf32> -> vector<8x128xf32>
    %c0_3 = arith.constant 0 : index
    %c0_4 = arith.constant 0 : index
    %4 = vector.load %arg3[%c0_3, %c0_4] : memref<1x128xf32, #tpu.memory_space<vmem>>, vector<1x128xf32>
    %5 = vector.broadcast %4 : vector<1x128xf32> to vector<8x128xf32>
    %6 = arith.addf %3, %5 : vector<8x128xf32>
    %cst_5 = arith.constant dense<0xFF800000> : vector<8xf32>
    %7 = vector.multi_reduction <maximumf>, %6, %cst_5 [1] : vector<8x128xf32> to vector<8xf32>
    %8 = vector.shape_cast %7 : vector<8xf32> to vector<8x1xf32>
    %9 = vector.broadcast %8 : vector<8x1xf32> to vector<8x128xf32>
    %10 = arith.subf %6, %9 : vector<8x128xf32>
    %11 = math.exp %10 : vector<8x128xf32>
    %cst_6 = arith.constant dense<0.000000e+00> : vector<8xf32>
    %12 = vector.multi_reduction <add>, %11, %cst_6 [1] : vector<8x128xf32> to vector<8xf32>
    %13 = vector.shape_cast %12 : vector<8xf32> to vector<8x1xf32>
    %14 = math.log %13 : vector<8x1xf32>
    %15 = arith.addf %8, %14 : vector<8x1xf32>
    %c0_7 = arith.constant 0 : index
    %c0_8 = arith.constant 0 : index
    %16 = vector.load %arg4[%c0_7, %c0_8] : memref<8x1xi32, #tpu.memory_space<vmem>>, vector<8x1xi32>
    %17 = tpu.iota {dimensions = array<i32: 1>} : vector<8x128xi32>
    %18 = vector.broadcast %16 : vector<8x1xi32> to vector<8x128xi32>
    %19 = arith.cmpi eq, %17, %18 : vector<8x128xi32>
    %cst_9 = arith.constant 0.000000e+00 : f32
    %20 = vector.broadcast %cst_9 : f32 to vector<8x128xf32>
    %21 = arith.select %19, %6, %20 : vector<8x128xi1>, vector<8x128xf32>
    %cst_10 = arith.constant dense<0.000000e+00> : vector<8xf32>
    %22 = vector.multi_reduction <add>, %21, %cst_10 [1] : vector<8x128xf32> to vector<8xf32>
    %23 = vector.shape_cast %22 : vector<8xf32> to vector<8x1xf32>
    %24 = vector.broadcast %8 : vector<8x1xf32> to vector<8x128xf32>
    %25 = arith.cmpf oeq, %6, %24 : vector<8x128xf32>
    %c128_i32 = arith.constant 128 : i32
    %26 = vector.broadcast %c128_i32 : i32 to vector<8x128xi32>
    %27 = arith.select %25, %17, %26 : vector<8x128xi1>, vector<8x128xi32>
    %cst_11 = arith.constant dense<2147483647> : vector<8xi32>
    %28 = vector.multi_reduction <minsi>, %27, %cst_11 [1] : vector<8x128xi32> to vector<8xi32>
    %29 = vector.shape_cast %28 : vector<8xi32> to vector<8x1xi32>
    %30 = arith.subf %15, %23 : vector<8x1xf32>
    %31 = vector.shape_cast %30 : vector<8x1xf32> to vector<1x8x1xf32>
    %cst_12 = arith.constant dense<0.000000e+00> : vector<1xf32>
    %32 = vector.multi_reduction <add>, %31, %cst_12 [1, 2] : vector<1x8x1xf32> to vector<1xf32>
    %33 = vector.shape_cast %32 : vector<1xf32> to vector<1x1x1xf32>
    %34 = vector.extract %33[0, 0, 0] : f32 from vector<1x1x1xf32>
    %35 = arith.cmpi eq, %29, %16 : vector<8x1xi32>
    %36 = arith.extui %35 : vector<8x1xi1> to vector<8x1xi32>
    %37 = arith.sitofp %36 : vector<8x1xi32> to vector<8x1xf32>
    %38 = vector.shape_cast %37 : vector<8x1xf32> to vector<1x8x1xf32>
    %cst_13 = arith.constant dense<0.000000e+00> : vector<1xf32>
    %39 = vector.multi_reduction <add>, %38, %cst_13 [1, 2] : vector<1x8x1xf32> to vector<1xf32>
    %40 = vector.shape_cast %39 : vector<1xf32> to vector<1x1x1xf32>
    %41 = vector.extract %40[0, 0, 0] : f32 from vector<1x1x1xf32>
    %42 = vector.broadcast %34 : f32 to vector<1x8x128xf32>
    %c0_14 = arith.constant 0 : index
    %c0_15 = arith.constant 0 : index
    %c0_16 = arith.constant 0 : index
    %43 = vector.load %arg5[%c0_14, %c0_15, %c0_16] : memref<1x8x128xf32, #tpu.memory_space<vmem>>, vector<1x8x128xf32>
    tpu.vector_store %arg5[%c0_14, %c0_15, %c0_16], %42 {strides = array<i32>} : memref<1x8x128xf32, #tpu.memory_space<vmem>>, vector<1x8x128xf32>,
    %44 = vector.broadcast %41 : f32 to vector<1x8x128xf32>
    %c0_17 = arith.constant 0 : index
    %c0_18 = arith.constant 0 : index
    %c0_19 = arith.constant 0 : index
    %45 = vector.load %arg6[%c0_17, %c0_18, %c0_19] : memref<1x8x128xf32, #tpu.memory_space<vmem>>, vector<1x8x128xf32>
    tpu.vector_store %arg6[%c0_17, %c0_18, %c0_19], %44 {strides = array<i32>} : memref<1x8x128xf32, #tpu.memory_space<vmem>>, vector<1x8x128xf32>,
    return
  }
  func.func @transform_0(%arg0: i32) -> (i32, i32) {
    %c0_i32 = arith.constant 0 : i32
    %c0_i32_0 = arith.constant 0 : i32
    return %arg0, %c0_i32 : i32, i32
  }
  func.func @transform_1(%arg0: i32) -> (i32, i32) {
    %c0_i32 = arith.constant 0 : i32
    %c0_i32_0 = arith.constant 0 : i32
    %c0_i32_1 = arith.constant 0 : i32
    return %c0_i32, %c0_i32_0 : i32, i32
  }
  func.func @transform_2(%arg0: i32) -> (i32, i32) {
    %c0_i32 = arith.constant 0 : i32
    %c0_i32_0 = arith.constant 0 : i32
    %c0_i32_1 = arith.constant 0 : i32
    return %c0_i32, %c0_i32_0 : i32, i32
  }
  func.func @transform_3(%arg0: i32) -> (i32, i32) {
    %c0_i32 = arith.constant 0 : i32
    %c0_i32_0 = arith.constant 0 : i32
    return %arg0, %c0_i32 : i32, i32
  }
  func.func @transform_4(%arg0: i32) -> (i32, i32, i32) {
    %c0_i32 = arith.constant 0 : i32
    %c0_i32_0 = arith.constant 0 : i32
    %c0_i32_1 = arith.constant 0 : i32
    return %arg0, %c0_i32, %c0_i32_0 : i32, i32, i32
  }
  func.func @transform_5(%arg0: i32) -> (i32, i32, i32) {
    %c0_i32 = arith.constant 0 : i32
    %c0_i32_0 = arith.constant 0 : i32
    %c0_i32_1 = arith.constant 0 : i32
    return %arg0, %c0_i32, %c0_i32_0 : i32, i32, i32
  }
}

</mosaic_0001>

<bundles_post_ra>
// kernel: tpu_custom_call.1
= control target key start
LH: loop header
LB: loop body
LE: loop exit
PB: predicated region body
PF: predicated region fallthrough
CT: control target
= control target key end

     0   :  { %11 = vsyncpa [#allocation3], 0  ;;  %s477_s0 = inlined_call_operand.vmem [shape: f32[8,128], index: 0, kind: input, shape index: {}]   ;;  %s478_s1 = inlined_call_operand.hbm [shape: bf16[128,128], index: 1, kind: input, shape index: {}]   ;;  %s479_s2 = inlined_call_operand.vmem [shape: f32[1,128], index: 2, kind: input, shape index: {}]   ;;  %s480_s3 = inlined_call_operand.vmem [shape: s32[8,1], index: 3, kind: input, shape index: {}]   ;;  %s481_s4 = inlined_call_operand.hbm [shape: f32[1,8,128], index: 4, kind: output, shape index: {0}]   ;;  %s482_s5 = inlined_call_operand.hbm [shape: f32[1,8,128], index: 5, kind: output, shape index: {1}]  }
   0x1   :  { %12 = vsyncpa [#allocation4], 0 }
   0x2   :  { %13 = vsyncpa [#allocation7], 0  ;;  %s380_s18 = smov [#allocation2]   ;;  %s308_s22 = scalar_lea.hbm %s478_s1, 1024 }
   0x3   :  { %s21_s19 = sshll.u32 %s380_s18, 4  ;;  %p309_p0 = scmp.ne.s32.totalorder %s478_s1, %s308_s22  ;;  %s22_s19 = int_to_ptr.vmem [resolvable:$true] %s21_s19 }
   0x4   :  { %p312_p1 = scmp.lt.u32.totalorder %s308_s22, %s478_s1 }
   0x6   :  { %p314_p2 = pnand %p312_p1, %p309_p0 }
   0x8   :  { %317 = shalt.err (!%p314_p2)
}
   0x9   :  { %s318_s27 = scalar_lea.vmem %s22_s19, 1024  ;;  %p323_p4 = scmp.lt.s32.totalorder %s22_s19, %s22_s19 }
   0xa   :  { %p319_p3 = scmp.ne.s32.totalorder %s22_s19, %s318_s27  ;;  %p324_p5 = scmp.lt.s32.totalorder %s318_s27, %s318_s27 }
   0xc   :  { %p325_p6 = por %p324_p5, %p323_p4 }
   0xe   :  { %p326_p7 = pnand %p325_p6, %p319_p3 }
  0x10   :  { %329 = shalt.err (!%p326_p7)
}
  0x11   :  { %s381_s28 = smov 64   ;;  %s382_s29 = smov 4  }
  0x12   :  { %27 = dma.hbm_to_vmem [thread:$0]  %s478_s1, 1024, %s22_s19, [#allocation3], %s381_s28, %s381_s28, %s382_s29  }
  0x13   :  { %374 = dma.done.wait [#allocation3], 1024  }
  0x14   :  { %375 = vsyncadd [#allocation3], 4294966272  ;;  %v383_v0 = vmov 0.0   ;;  %vm384_vm0 = vmmov 0   ;;  %v385_v1 = vmov 0   ;;  %v296_v2 = vld [vmem:[#allocation2] sm:$0xff]   ;;  %v160_v19 = vlaneseq }
  0x15   :  { %262 = vmatprep.subr.bf16.mxu0 %v383_v0  ;;  %278 = vmatprep.mubr.msk.bf16.mxu0 %vm384_vm0, %v383_v0  ;;  %v297_v3 = vld [vmem:[#allocation2 + $0x8] sm:$0xff]   ;;  %v298_v4 = vld [vmem:[#allocation2 + $0x10] sm:$0xff]   ;;  %v437_v5 = vld [vmem:[%s480_s3] sm:$0xff]  ;;  %vm186_vm4 = vcmask 7168   ;;  %s387_s12 = smov [#allocation6]  }
  0x16   :  { %294 = vset.pattern.permute.xlu1 %v385_v1  ;;  %295 = vset.pattern.permute.xlu0 %v385_v1  ;;  %v299_v6 = vld [vmem:[#allocation2 + $0x18] sm:$0xff]   ;;  %v300_v7 = vld [vmem:[#allocation2 + $0x20] sm:$0xff]   ;;  %v301_v8 = vld [vmem:[#allocation2 + $0x28] sm:$0xff]   ;;  %v161_v20 = vand.u32 127, %v160_v19  ;;  %s230_s13 = sshll.u32 %s387_s12, 4  ;;  %s231_s13 = int_to_ptr.vmem [resolvable:$true] %s230_s13 }
  0x17   :  { %263 = vmatpush3.bf16.msra.mxu0 %v296_v2  ;;  %163 = vperm.xlu1 %294, %v437_v5   ;;  %v302_v9 = vld [vmem:[#allocation2 + $0x30] sm:$0xff]   ;;  %v303_v10 = vld [vmem:[#allocation2 + $0x38] sm:$0xff]   ;;  %v36_v11 = vld [vmem:[%s477_s0] sm:$0xff]  ;;  %s386_s0 = smov [#allocation5]  }
  0x18   :  { %264 = vmatprep.subr.bf16.mxu0 %v383_v0  ;;  %v37_v12 = vpack.c.bf16 %v36_v11, %v36_v11  ;;  %v243_v13 = vld [vmem:[%s479_s2] ss:$0 sm:$0xff]  ;;  %s220_s2 = sshll.u32 %s386_s0, 4  ;;  %s221_s2 = int_to_ptr.vmem [resolvable:$true] %s220_s2 }
  0x19   :  { %s330_s14 = scalar_lea.vmem %s221_s2, 128  ;;  %p335_p9 = scmp.lt.s32.totalorder %s221_s2, %s221_s2 }
  0x1a   :  { %p331_p8 = scmp.ne.s32.totalorder %s221_s2, %s330_s14  ;;  %p336_p10 = scmp.lt.s32.totalorder %s330_s14, %s330_s14 }
  0x1b   :  { %265 = vmatpush3.bf16.msra.mxu0 %v297_v3 }
  0x1c   :  { %266 = vmatprep.subr.bf16.mxu0 %v383_v0  ;;  %p337_p11 = por %p336_p10, %p335_p9 }
  0x1e   :  { %p338_p12 = pnand %p337_p11, %p331_p8 }
  0x1f   :  { %267 = vmatpush3.bf16.msra.mxu0 %v298_v4 }
  0x20   :  { %268 = vmatprep.subr.bf16.mxu0 %v383_v0 }
  0x23   :  { %269 = vmatpush3.bf16.msra.mxu0 %v299_v6 }
  0x24   :  { %270 = vmatprep.subr.bf16.mxu0 %v383_v0 }
  0x27   :  { %271 = vmatpush3.bf16.msra.mxu0 %v300_v7 }
  0x28   :  { %272 = vmatprep.subr.bf16.mxu0 %v383_v0 }
  0x2b   :  { %273 = vmatpush3.bf16.msra.mxu0 %v301_v8 }
  0x2c   :  { %274 = vmatprep.subr.bf16.mxu0 %v383_v0 }
  0x2f   :  { %275 = vmatpush3.bf16.msra.mxu0 %v302_v9 }
  0x30   :  { %276 = vmatprep.subr.bf16.mxu0 %v383_v0 }
  0x33   :  { %277 = vmatpush3.bf16.msra.mxu0 %v303_v10 }
  0x36   :  { %279 = vmatmul.mubr.bf16.vlgmr.msra.gmra.mrb[0].mxu0 %v37_v12 }
  0x96   :  { %v164_v29 = vpop.permute.xlu1 %163 }
  0x97   :  { %vm165_vm3 = vcmp.eq.s32.totalorder %v161_v20, %v164_v29 }
 0x109   :  { %v143_v14 = vpop.f32.mrb[0].mxu0 }
 0x10a   :  { %v144_v15 = vadd.f32 %v243_v13, %v143_v14  ;;  %v280_v16 = vpop.f32.mrb[1].mxu0 }
 0x10b   :  { %v146_v17 = vpop.f32.mrb[2].mxu0 }
 0x10c   :  { %149 = vmax.xlane.f32.xlu0 %v144_v15  ;;  %v281_v18 = vpop.f32.mrb[3].mxu0  ;;  %v166_v33 = vsel %vm165_vm3, %v144_v15, 0.0 }
 0x199   :  { %v150_v21 = vpop.xlane.xlu0 %149 }
 0x19a   :  { %v151_v22 = vsub.f32 %v144_v15, %v150_v21  ;;  %vm169_vm1 = vcmp.eq.f32.partialorder %v144_v15, %v150_v21 }
 0x19b   :  { %v170_v23 = vsel %vm169_vm1, %v161_v20, 128 }
 0x19c   :  { %v152_v24 = vmul.f32 1.442695, %v151_v22  ;;  %v172_v25 = vshra.s32 %v170_v23, 16  ;;  %v171_v28 = vand.u32 65535, %v170_v23 }
 0x19e   :  { %304 = vpow2.f32 %v152_v24  ;;  %v174_v26 = vcvt.s32.f32 %v172_v25  ;;  %v173_v31 = vcvt.s32.f32 %v171_v28 }
 0x1a0   :  { %175 = vmin.xlane.f32.xlu0 %v174_v26 }
 0x1a8   :  { %v305_v27 = vpop.eup %304 }
 0x1a9   :  { %154 = vadd.xlane.f32.xlu1 %v305_v27 }
 0x22d   :  { %v176_v30 = vpop.xlane.xlu0 %175 }
 0x22e   :  { %vm177_vm2 = vcmp.eq.f32.partialorder %v174_v26, %v176_v30  ;;  %v182_v36 = vcvt.f32.s32 %v176_v30 }
 0x22f   :  { %v178_v32 = vsel %vm177_vm2, %v173_v31, inf }
 0x230   :  { %179 = vmin.xlane.f32.xlu0 %v178_v32  ;;  %v183_v39 = vshll.u32 %v182_v36, 16 }
 0x234   :  { %167 = vadd.xlane.f32.xlu0 %v166_v33 }
 0x236   :  { %v155_v34 = vpop.xlane.xlu1 %154 }
 0x237   :  { %306 = vlog2.f32 %v155_v34 }
 0x241   :  { %v307_v35 = vpop.eup %306 }
 0x242   :  { %v157_v37 = vmul.f32 0.6931472, %v307_v35 }
 0x244   :  { %v158_v42 = vadd.f32 %v157_v37, %v150_v21 }
 0x2bd   :  { %v180_v38 = vpop.xlane.xlu0 %179 }
 0x2be   :  { %v181_v40 = vcvt.f32.s32 %v180_v38 }
 0x2c0   :  { %v184_v41 = vadd.s32 %v183_v39, %v181_v40 }
 0x2c1   :  { %v168_v43 = vpop.xlane.xlu0 %167 }
 0x2c2   :  { %v185_v44 = vsub.f32 %v158_v42, %v168_v43  ;;  %vm197_vm5 = vcmp.eq.s32.totalorder %v184_v41, %v437_v5 }
 0x2c3   :  { %v252_v46 = vsel %vm197_vm5, 1.0, %v383_v0 }
 0x2c4   :  { %v187_v45 = vsel %vm186_vm4, %v185_v44, 0.0  ;;  %v200_v47 = vsel %vm186_vm4, %v252_v46, 0.0 }
 0x2c5   :  { %188 = vadd.xlane.f32.xlu0 %v187_v45 }
 0x2c9   :  { %201 = vadd.xlane.f32.xlu0 %v200_v47 }
 0x352   :  { %v189_v48 = vpop.xlane.xlu0 %188 }
 0x353   :  { %v190_v49 = vrot.slane %v189_v48, 4 }
 0x355   :  { %v191_v50 = vadd.f32 %v190_v49, %v189_v48 }
 0x356   :  { %v202_v51 = vpop.xlane.xlu0 %201 }
 0x357   :  { %v192_v52 = vrot.slane %v191_v50, 2  ;;  %v203_v53 = vrot.slane %v202_v51, 4 }
 0x359   :  { %v204_v54 = vadd.f32 %v203_v53, %v202_v51  ;;  %v193_v55 = vadd.f32 %v192_v52, %v191_v50 }
 0x35b   :  { %v205_v56 = vrot.slane %v204_v54, 2  ;;  %v194_v57 = vrot.slane %v193_v55, 1 }
 0x35d   :  { %v206_v58 = vadd.f32 %v205_v56, %v204_v54  ;;  %v195_v59 = vadd.f32 %v194_v57, %v193_v55 }
 0x35f   :  { %282 = vpush %v195_v59  ;;  %v207_v60 = vrot.slane %v206_v58, 1 }
 0x361   :  { %v208_v61 = vadd.f32 %v207_v60, %v206_v58 }
 0x363   :  { %284 = vpush %v208_v61 }
 0x390   :  { %s283_s11 = spop %282 }
 0x391   :  { %v210_v62 = vstv %s283_s11 }
 0x392   :  { %211 = vst [vmem:[#allocation5] sm:$0xff] %v210_v62 }
 0x393   :  { %341 = shalt.err (!%p338_p12)
}
 0x394   :  { %s342_s17 = scalar_lea.hbm %s481_s4, 128 }
 0x395   :  { %p343_p13 = scmp.ne.s32.totalorder %s481_s4, %s342_s17  ;;  %p346_p0 = scmp.lt.u32.totalorder %s342_s17, %s481_s4 }
 0x397   :  { %p348_p1 = pnand %p346_p0, %p343_p13 }
 0x399   :  { %351 = shalt.err (!%p348_p1)
}
 0x39a   :  { %223 = dma.vmem_to_hbm [thread:$0]  %s221_s2, 128, %s481_s4, [#allocation4]  }
 0x39b   :  { %s285_s24 = spop %284  ;;  %s352_s25 = scalar_lea.vmem %s231_s13, 128 }
 0x39c   :  { %v212_v63 = vstv %s285_s24  ;;  %p353_p2 = scmp.ne.s32.totalorder %s231_s13, %s352_s25  ;;  %p357_p3 = scmp.lt.s32.totalorder %s231_s13, %s231_s13 }
 0x39d   :  { %213 = vst [vmem:[#allocation6] sm:$0xff] %v212_v63  ;;  %p358_p4 = scmp.lt.s32.totalorder %s352_s25, %s352_s25 }
 0x39f   :  { %p359_p5 = por %p358_p4, %p357_p3 }
 0x3a1   :  { %p360_p6 = pnand %p359_p5, %p353_p2 }
 0x3a3   :  { %363 = shalt.err (!%p360_p6)
}
 0x3a4   :  { %s364_s28 = scalar_lea.hbm %s482_s5, 128 }
 0x3a5   :  { %p365_p7 = scmp.ne.s32.totalorder %s482_s5, %s364_s28  ;;  %p368_p8 = scmp.lt.u32.totalorder %s364_s28, %s482_s5 }
 0x3a7   :  { %p370_p9 = pnand %p368_p8, %p365_p7 }
 0x3a9   :  { %373 = shalt.err (!%p370_p9)
}
 0x3aa   :  { %233 = dma.vmem_to_hbm [thread:$0]  %s231_s13, 128, %s482_s5, [#allocation7]  }
 0x3ab   :  { %376 = dma.done.wait [#allocation4], 128  }
 0x3ac   :  { %377 = vsyncadd [#allocation4], 4294967168 }
 0x3ad   :  { %378 = dma.done.wait [#allocation7], 128  }
 0x3ae   :  { %379 = vsyncadd [#allocation7], 4294967168 }
 0x3af   :  { %240 = vsyncpa [#allocation3], 1 }
 0x3b0   :  { %241 = vsyncpa [#allocation4], 1 }
 0x3b1   :  { %242 = vsyncpa [#allocation7], 1 }

</bundles_post_ra>
